<compile_context>
chip_gen: v7x
topology: tpu7x:2x2x1
jax: 0.10.0
libtpu: 0.0.40
codegen_flags: <defaults>
</compile_context>

<pallas_src>
import math

import jax
import jax.numpy as jnp
from jax.experimental import pallas as pl
from jax.experimental.pallas import tpu as pltpu


def _round_up(n, m):
    return ((n + m - 1) // m) * m


def _vmem_policy():
    """Returns (vmem_limit_bytes to request, tile-sizing budget in bytes)."""
    try:
        phys = int(pltpu.get_tpu_info().vmem_capacity_bytes)
    except Exception:  # pragma: no cover - fall back to the smallest (v7x) VMEM
        phys = 64 << 20
    if phys >= (128 << 20):          # v5e / v6e: 128 MiB physical
        limit = 100 << 20
    else:                            # v7x: 64 MiB per TensorCore
        limit = max(phys - (8 << 20), 32 << 20)
    budget = int(limit * 0.9)        # headroom for compiler-internal scratch
    return limit, budget


# --------------------------------------------------------------------------
# Kernels
# --------------------------------------------------------------------------
def _ffn_resident_kernel(x_ref, w1_ref, b1_ref, w2_ref, b2_ref, o_ref):
    """Whole W1/W2 resident in VMEM; 1-D grid over row tiles."""
    h = jnp.dot(x_ref[...], w1_ref[...], preferred_element_type=jnp.float32)
    h = jnp.maximum(h + b1_ref[...], 0.0)
    y = jnp.dot(h.astype(w2_ref.dtype), w2_ref[...],
                preferred_element_type=jnp.float32)
    o_ref[...] = (y + b2_ref[...]).astype(o_ref.dtype)


def _ffn_streamed_kernel(x_ref, w1_ref, b1_ref, w2_ref, b2_ref, o_ref, acc_ref):
    """d_ff streamed as the last ('arbitrary') grid axis; f32 accumulator."""
    k = pl.program_id(1)

    @pl.when(k == 0)
    def _init():
        # Seed the accumulator with b2 -> no separate finalize add needed.
        acc_ref[...] = jnp.broadcast_to(b2_ref[...], acc_ref.shape)

    h = jnp.dot(x_ref[...], w1_ref[...], preferred_element_type=jnp.float32)
    h = jnp.maximum(h + b1_ref[...], 0.0)
    acc_ref[...] += jnp.dot(h.astype(w2_ref.dtype), w2_ref[...],
                            preferred_element_type=jnp.float32)

    @pl.when(k == pl.num_programs(1) - 1)
    def _store():
        o_ref[...] = acc_ref[...].astype(o_ref.dtype)


# --------------------------------------------------------------------------
# Wrapper
# --------------------------------------------------------------------------
def feed_forward(x, w1, b1, w2, b2, *, tm=512, compute_dtype=jnp.bfloat16,
                 force_streamed=False, tf_override=None):
    """x: [B, S, d_model]; w1: [d_model, d_ff]; b1: [d_ff]; w2: [d_ff, d_model]; b2: [d_model]."""
    B, S, d_model = x.shape
    d_ff = w1.shape[1]
    assert w1.shape == (d_model, d_ff)
    assert b1.shape == (d_ff,)
    assert w2.shape == (d_ff, d_model)
    assert b2.shape == (d_model,)

    M = B * S
    out_dtype = x.dtype
    out_itemsize = jnp.dtype(out_dtype).itemsize
    cbytes = jnp.dtype(compute_dtype).itemsize

    vmem_limit, budget = _vmem_policy()

    # Per-row-tile footprint: x tile (bf16, 2 bufs) + out tile (2 bufs) + f32 acc.
    def _row_bytes(t):
        return t * d_model * (2 * cbytes + 2 * out_itemsize + 4)

    # ---- Row tiling: balanced for ragged M, shrunk if it alone blows VMEM. ----
    n_row_tiles = max(1, math.ceil(M / max(tm, 8)))
    tm_eff = _round_up(math.ceil(M / n_row_tiles), 8)
    while tm_eff > 8 and _row_bytes(tm_eff) > budget // 2:
        n_row_tiles *= 2
        tm_eff = _round_up(math.ceil(M / n_row_tiles), 8)
    n_row_tiles = math.ceil(M / tm_eff)

    # ---- Residency decision (conservatively counts 2 buffers per weight). ----
    resident_need = (_row_bytes(tm_eff)
                     + 2 * 2 * d_model * d_ff * cbytes      # W1 + W2
                     + 2 * d_ff * 4 + 2 * d_model * 4       # b1 + b2
                     + tm_eff * d_ff * (4 + cbytes))        # h f32 + bf16 cast
    use_resident = (not force_streamed) and resident_need <= budget

    # Two parallel row tiles when cheap, so v7x's 2 TensorCores both get work.
    if use_resident and n_row_tiles == 1 and M > 8:
        n_row_tiles = 2
        tm_eff = _round_up(math.ceil(M / n_row_tiles), 8)
        n_row_tiles = math.ceil(M / tm_eff)

    Mp = tm_eff * n_row_tiles

    # ---- Prepare arrays (bf16 MXU inputs, f32 biases). ----
    x2d = x.reshape(M, d_model).astype(compute_dtype)
    if Mp != M:
        x2d = jnp.pad(x2d, ((0, Mp - M), (0, 0)))
    w1c = w1.astype(compute_dtype)
    w2c = w2.astype(compute_dtype)
    b1_2d = b1.reshape(1, d_ff).astype(jnp.float32)
    b2_2d = b2.reshape(1, d_model).astype(jnp.float32)

    if use_resident:
        cost = pl.CostEstimate(
            flops=4 * Mp * d_model * d_ff,
            transcendentals=0,
            bytes_accessed=(Mp * d_model * cbytes
                            + 2 * d_model * d_ff * cbytes       # weights once
                            + 4 * (d_ff + d_model)
                            + Mp * d_model * out_itemsize))
        out2d = pl.pallas_call(
            _ffn_resident_kernel,
            out_shape=jax.ShapeDtypeStruct((Mp, d_model), out_dtype),
            grid_spec=pltpu.PrefetchScalarGridSpec(
                num_scalar_prefetch=0,
                grid=(n_row_tiles,),
                in_specs=[
                    pl.BlockSpec((tm_eff, d_model), lambda i: (i, 0)),  # x rows
                    pl.BlockSpec((d_model, d_ff), lambda i: (0, 0)),    # W1 whole
                    pl.BlockSpec((1, d_ff), lambda i: (0, 0)),          # b1
                    pl.BlockSpec((d_ff, d_model), lambda i: (0, 0)),    # W2 whole
                    pl.BlockSpec((1, d_model), lambda i: (0, 0)),       # b2
                ],
                out_specs=pl.BlockSpec((tm_eff, d_model), lambda i: (i, 0)),
            ),
            compiler_params=pltpu.CompilerParams(
                dimension_semantics=("parallel",),
                vmem_limit_bytes=vmem_limit),
            cost_estimate=cost,
        )(x2d, w1c, b1_2d, w2c, b2_2d)
        return out2d[:M].reshape(B, S, d_model)

    # ---- Streamed path: 256-aligned tf solved from the remaining budget. ----
    fixed = _row_bytes(tm_eff) + 2 * d_model * 4
    per_tf = (4 * d_model * cbytes          # W1 + W2 chunks, double-buffered
              + 2 * 4                        # b1 chunk, double-buffered
              + tm_eff * (4 + cbytes))       # h f32 + its bf16 cast
    tf = (budget - fixed) // per_tf
    tf = max(256, (tf // 256) * 256)
    if tf_override is not None:
        tf = max(256, (int(tf_override) // 256) * 256)
    tf = min(tf, _round_up(d_ff, 256))
    d_ff_p = _round_up(d_ff, tf)
    n_ff = d_ff_p // tf

    if d_ff_p != d_ff:
        pad = d_ff_p - d_ff
        w1c = jnp.pad(w1c, ((0, 0), (0, pad)))    # zero cols -> zero contribution
        w2c = jnp.pad(w2c, ((0, pad), (0, 0)))    # zero rows -> zero contribution
        b1_2d = jnp.pad(b1_2d, ((0, 0), (0, pad)))

    cost = pl.CostEstimate(
        flops=4 * Mp * d_model * d_ff_p,
        transcendentals=0,
        bytes_accessed=(Mp * d_model * cbytes
                        + n_row_tiles * 2 * d_model * d_ff_p * cbytes  # re-streamed
                        + n_row_tiles * 4 * (d_ff_p + d_model)
                        + Mp * d_model * out_itemsize))
    out2d = pl.pallas_call(
        _ffn_streamed_kernel,
        out_shape=jax.ShapeDtypeStruct((Mp, d_model), out_dtype),
        grid_spec=pltpu.PrefetchScalarGridSpec(
            num_scalar_prefetch=0,
            grid=(n_row_tiles, n_ff),
            in_specs=[
                pl.BlockSpec((tm_eff, d_model), lambda i, k: (i, 0)),  # x rows
                pl.BlockSpec((d_model, tf), lambda i, k: (0, k)),      # W1 chunk
                pl.BlockSpec((1, tf), lambda i, k: (0, k)),            # b1 chunk
                pl.BlockSpec((tf, d_model), lambda i, k: (k, 0)),      # W2 chunk
                pl.BlockSpec((1, d_model), lambda i, k: (0, 0)),       # b2
            ],
            out_specs=pl.BlockSpec((tm_eff, d_model), lambda i, k: (i, 0)),
            scratch_shapes=[pltpu.VMEM((tm_eff, d_model), jnp.float32)],
        ),
        compiler_params=pltpu.CompilerParams(
            dimension_semantics=("parallel", "arbitrary"),
            vmem_limit_bytes=vmem_limit),
        cost_estimate=cost,
    )(x2d, w1c, b1_2d, w2c, b2_2d)
    return out2d[:M].reshape(B, S, d_model)


def init_params(key, d_model, d_ff, dtype=jnp.float32):
    """Deterministic init mimicking nn.Linear's U(-1/sqrt(fan_in), 1/sqrt(fan_in))."""
    k1, k2, k3, k4 = jax.random.split(key, 4)
    bound1 = 1.0 / math.sqrt(d_model)
    bound2 = 1.0 / math.sqrt(d_ff)
    # stored as [in, out] (transposed vs torch's [out, in])
    w1 = jax.random.uniform(k1, (d_model, d_ff), dtype, -bound1, bound1)
    b1 = jax.random.uniform(k2, (d_ff,), dtype, -bound1, bound1)
    w2 = jax.random.uniform(k3, (d_ff, d_model), dtype, -bound2, bound2)
    b2 = jax.random.uniform(k4, (d_model,), dtype, -bound2, bound2)
    return w1, b1, w2, b2


if __name__ == "__main__":
    key = jax.random.PRNGKey(0)
    kx, kp = jax.random.split(key)

    # Small shapes; S=7 exercises ragged-M row padding.
    B, S, d_model, d_ff = 2, 7, 32, 256
    x = jax.random.normal(kx, (B, S, d_model), jnp.float32)
    w1, b1, w2, b2 = init_params(kp, d_model, d_ff)

    def ref_bf16(x, w1, b1, w2, b2):
        h = jnp.dot(x.astype(jnp.bfloat16), w1.astype(jnp.bfloat16),
                    preferred_element_type=jnp.float32) + b1
        h = jnp.maximum(h, 0.0)
        return jnp.dot(h.astype(jnp.bfloat16), w2.astype(jnp.bfloat16),
                       preferred_element_type=jnp.float32) + b2

    # 1) Default path: weights are VMEM-resident at these shapes (1-D grid).
    out = jax.block_until_ready(feed_forward(x, w1, b1, w2, b2))
    assert out.shape == (B, S, d_model)
    assert jnp.allclose(out, ref_bf16(x, w1, b1, w2, b2), atol=1e-3, rtol=1e-3)
    ref_f32 = jnp.maximum(x @ w1 + b1, 0.0) @ w2 + b2
    assert jnp.allclose(out, ref_f32, atol=5e-2, rtol=5e-2)

    # 2) Streamed-reduction path: ragged d_ff=640 (padded to 768 -> 3 chunks of
    #    256) and 2 row tiles; exercises accumulation, padding, init/store gating.
    d_ff2 = 640
    w1s, b1s, w2s, b2s = init_params(jax.random.PRNGKey(1), d_model, d_ff2)
    out2 = jax.block_until_ready(
        feed_forward(x, w1s, b1s, w2s, b2s, tm=8,
                     force_streamed=True, tf_override=256))
    assert out2.shape == (B, S, d_model)
    assert jnp.allclose(out2, ref_bf16(x, w1s, b1s, w2s, b2s),
                        atol=1e-3, rtol=1e-3)

    print("KERNEL_OK")
</pallas_src>

<mosaic_0001>
module attributes {stable_mosaic.version = 11 : i64} {
  func.func @_ffn_resident_kernel(%arg0: i32, %arg1: memref<8x32xbf16, #tpu.memory_space<vmem>>, %arg2: memref<32x256xbf16, #tpu.memory_space<vmem>>, %arg3: memref<1x256xf32, #tpu.memory_space<vmem>>, %arg4: memref<256x32xbf16, #tpu.memory_space<vmem>>, %arg5: memref<1x32xf32, #tpu.memory_space<vmem>>, %arg6: memref<8x32xf32, #tpu.memory_space<vmem>>) attributes {dimension_semantics = [#tpu.dimension_semantics<parallel>], iteration_bounds = array<i64: 2>, scalar_prefetch = 0 : i64, scratch_operands = 0 : i64, tpu.core_type = #tpu.core_type<tc>, window_params = [{transform_indices = @transform_0, window_bounds = array<i64: 8, 32>}, {pipeline_mode = #tpu.pipeline_mode<synchronous>, transform_indices = @transform_1, window_bounds = array<i64: 32, 256>}, {pipeline_mode = #tpu.pipeline_mode<synchronous>, transform_indices = @transform_2, window_bounds = array<i64: 1, 256>}, {pipeline_mode = #tpu.pipeline_mode<synchronous>, transform_indices = @transform_3, window_bounds = array<i64: 256, 32>}, {pipeline_mode = #tpu.pipeline_mode<synchronous>, transform_indices = @transform_4, window_bounds = array<i64: 1, 32>}, {transform_indices = @transform_5, window_bounds = array<i64: 8, 32>}]} {
    %c0 = arith.constant 0 : index
    %c0_0 = arith.constant 0 : index
    %0 = vector.load %arg1[%c0, %c0_0] : memref<8x32xbf16, #tpu.memory_space<vmem>>, vector<8x32xbf16>
    %c0_1 = arith.constant 0 : index
    %c0_2 = arith.constant 0 : index
    %1 = vector.load %arg2[%c0_1, %c0_2] : memref<32x256xbf16, #tpu.memory_space<vmem>>, vector<32x256xbf16>
    %cst = arith.constant dense<0.000000e+00> : vector<8x256xf32>
    %2 = tpu.matmul %0, %1, %cst {dimension_numbers = #tpu.dot_dimension_numbers<[1], [0], [0], [1], [0, 0, 1, 1], [], []>} : vector<8x32xbf16>, vector<32x256xbf16>, vector<8x256xf32> -> vector<8x256xf32>
    %c0_3 = arith.constant 0 : index
    %c0_4 = arith.constant 0 : index
    %3 = vector.load %arg3[%c0_3, %c0_4] : memref<1x256xf32, #tpu.memory_space<vmem>>, vector<1x256xf32>
    %4 = vector.broadcast %3 : vector<1x256xf32> to vector<8x256xf32>
    %5 = arith.addf %2, %4 : vector<8x256xf32>
    %cst_5 = arith.constant 0.000000e+00 : f32
    %6 = vector.broadcast %cst_5 : f32 to vector<8x256xf32>
    %7 = arith.maximumf %5, %6 : vector<8x256xf32>
    %8 = arith.truncf %7 : vector<8x256xf32> to vector<8x256xbf16>
    %c0_6 = arith.constant 0 : index
    %c0_7 = arith.constant 0 : index
    %9 = vector.load %arg4[%c0_6, %c0_7] : memref<256x32xbf16, #tpu.memory_space<vmem>>, vector<256x32xbf16>
    %cst_8 = arith.constant dense<0.000000e+00> : vector<8x32xf32>
    %10 = tpu.matmul %8, %9, %cst_8 {dimension_numbers = #tpu.dot_dimension_numbers<[1], [0], [0], [1], [0, 0, 1, 1], [], []>} : vector<8x256xbf16>, vector<256x32xbf16>, vector<8x32xf32> -> vector<8x32xf32>
    %c0_9 = arith.constant 0 : index
    %c0_10 = arith.constant 0 : index
    %11 = vector.load %arg5[%c0_9, %c0_10] : memref<1x32xf32, #tpu.memory_space<vmem>>, vector<1x32xf32>
    %12 = vector.broadcast %11 : vector<1x32xf32> to vector<8x32xf32>
    %13 = arith.addf %10, %12 : vector<8x32xf32>
    %c0_11 = arith.constant 0 : index
    %c0_12 = arith.constant 0 : index
    %14 = vector.load %arg6[%c0_11, %c0_12] : memref<8x32xf32, #tpu.memory_space<vmem>>, vector<8x32xf32>
    tpu.vector_store %arg6[%c0_11, %c0_12], %13 {strides = array<i32>} : memref<8x32xf32, #tpu.memory_space<vmem>>, vector<8x32xf32>,
    return
  }
  func.func @transform_0(%arg0: i32) -> (i32, i32) {
    %c0_i32 = arith.constant 0 : i32
    %c0_i32_0 = arith.constant 0 : i32
    return %arg0, %c0_i32 : i32, i32
  }
  func.func @transform_1(%arg0: i32) -> (i32, i32) {
    %c0_i32 = arith.constant 0 : i32
    %c0_i32_0 = arith.constant 0 : i32
    %c0_i32_1 = arith.constant 0 : i32
    return %c0_i32, %c0_i32_0 : i32, i32
  }
  func.func @transform_2(%arg0: i32) -> (i32, i32) {
    %c0_i32 = arith.constant 0 : i32
    %c0_i32_0 = arith.constant 0 : i32
    %c0_i32_1 = arith.constant 0 : i32
    return %c0_i32, %c0_i32_0 : i32, i32
  }
  func.func @transform_3(%arg0: i32) -> (i32, i32) {
    %c0_i32 = arith.constant 0 : i32
    %c0_i32_0 = arith.constant 0 : i32
    %c0_i32_1 = arith.constant 0 : i32
    return %c0_i32, %c0_i32_0 : i32, i32
  }
  func.func @transform_4(%arg0: i32) -> (i32, i32) {
    %c0_i32 = arith.constant 0 : i32
    %c0_i32_0 = arith.constant 0 : i32
    %c0_i32_1 = arith.constant 0 : i32
    return %c0_i32, %c0_i32_0 : i32, i32
  }
  func.func @transform_5(%arg0: i32) -> (i32, i32) {
    %c0_i32 = arith.constant 0 : i32
    %c0_i32_0 = arith.constant 0 : i32
    return %arg0, %c0_i32 : i32, i32
  }
}

</mosaic_0001>

<bundles_post_ra>
// kernel: tpu_custom_call.1
= control target key start
LH: loop header
LB: loop body
LE: loop exit
PB: predicated region body
PF: predicated region fallthrough
CT: control target
= control target key end

     0   :  { %10 = vsyncpa [#allocation3], 0  ;;  %s936_s0 = inlined_call_operand.vmem [shape: bf16[16,32], index: 0, kind: input, shape index: {}]   ;;  %s937_s1 = inlined_call_operand.vmem [shape: bf16[32,256], index: 1, kind: input, shape index: {}]   ;;  %s938_s2 = inlined_call_operand.vmem [shape: f32[1,256], index: 2, kind: input, shape index: {}]   ;;  %s939_s3 = inlined_call_operand.vmem [shape: bf16[256,32], index: 3, kind: input, shape index: {}]   ;;  %s940_s4 = inlined_call_operand.vmem [shape: f32[1,32], index: 4, kind: input, shape index: {}]   ;;  %s941_s5 = inlined_call_operand.hbm [shape: f32[16,32], index: 5, kind: output, shape index: {}]  }
   0x1   :  { %12 = vsyncpa [#allocation3 + $0x1], 0  ;;  %s768_s18 = smov 0   ;;  %s770_s19 = smov 0  }
   0x2   :  { %s772_s20 = smov 0   ;;  %s774_s21 = smov 0  }
   0x3 LB: > { %s789_s22 = sadd.s32 4294967295, %s734_s21   ;;  %s556_s23 = sadd.s32 4294967294, %s734_s21   ;;  %s734_s21 = sphi %s774_s21, %s947_s21   ;;  %s730_s20 = sphi %s772_s20, %s946_s20   ;;  %s726_s19 = sphi %s770_s19, %s945_s19   ;;  %s722_s18 = sphi %s768_s18, %s944_s18  }
   0x4   : > { %s793_s24 = sadd.s32 1, %s734_s21   ;;  %s135_s25 = sadd.s32 1, %s730_s20 }
   0x5   : > { %s132_s26 = ssub.s32 %s734_s21, %s793_s24  ;;  %p145_p0 = scmp.ne.s32.totalorder %s730_s20, %s726_s19 }
   0x6   : > { %p133_p1 = scmp.eq.s32.totalorder %s132_s26, 0  ;;  %p146_p2 = scmp.eq.s32.totalorder %s789_s22, 1 }
   0x7   : > { %p151_p3 = scmp.ne.s32.totalorder %s726_s19, %s722_s18  ;;  %p152_p4 = scmp.eq.s32.totalorder %s556_s23, 1 }
   0x8   : > { %s804_s27 = scalar_select %p133_p1, %s730_s20, %s135_s25  }
   0x9   : > { %p806_p5 = por %p146_p2, %p145_p0  ;;  %p810_p6 = por %p152_p4, %p151_p3 }
   0xa   : > { %p559_p7 = scmp.ge.s32.totalorder %s734_s21, 1  ;;  %p189_p8 = scmp.lt.s32.totalorder %s734_s21, 3 }
   0xc   : > { %p190_p9 = pnand %p559_p7, %p189_p8 }
   0xd   : > { %v650_v0 = vld [vmem:[%s937_s1 + $0x4] ss:$8 sps:$4 sm:$0xff] (!%p190_p9)   ;;  %p216_p10 = scmp.lt.s32.totalorder (!%p190_p9), %s789_s22, 1  ;;  %v652_v1 = vld [vmem:[%s937_s1] ss:$8 sps:$4 sm:$0xff] (!%p190_p9)   ;;  %v736_v2 = vmov (!%p190_p9), 0   ;;  %v228_v22 = vlaneseq (!%p190_p9) }
   0xe   : > { %193 = sbr.rel (%p190_p9) target bundleno = 477 (0x1dd), region = 40  ;;  %294 = vmatprep.mubr.bf16.mxu0 (!%p190_p9), %v736_v2  ;;  %262 = vmatprep.subr.bf16.mxu0 (!%p190_p9), %v650_v0  ;;  %v653_v3 = vld [vmem:[%s937_s1 + $0x14] ss:$8 sps:$4 sm:$0xff] (!%p190_p9)   ;;  %v655_v4 = vld [vmem:[%s937_s1 + $0x10] ss:$8 sps:$4 sm:$0xff] (!%p190_p9)   ;;  %v656_v5 = vld [vmem:[%s939_s3 + $0x40] sm:$0xff] (!%p190_p9)  }
   0xf   : > { %263 = vmatpush1.bf16.msra.mxu0 (!%p190_p9), %v652_v1  ;;  %588 = vmatprep.subr.bf16.mxu1 (!%p190_p9), %v656_v5  ;;  %v657_v6 = vld [vmem:[%s939_s3] sm:$0xff] (!%p190_p9)   ;;  %v658_v7 = vld [vmem:[%s939_s3 + $0x48] sm:$0xff] (!%p190_p9)   ;;  %vm258_vm0 = vcmask (!%p190_p9), 261120   ;;  %v660_v10 = vld [vmem:[%s939_s3 + $0x50] sm:$0xff] (!%p190_p9)   ;;  %v229_v23 = vshrl.u32 (!%p190_p9), %v228_v22, 7  ;;  %s213_s26 = sand.u32 (!%p190_p9), 1, %s726_s19  }
  0x10   : > { %264 = vmatprep.subr.bf16.mxu0 (!%p190_p9), %v653_v3  ;;  %589 = vmatpush3.bf16.msra.mxu1 (!%p190_p9), %v657_v6  ;;  %v659_v9 = vld [vmem:[%s939_s3 + $0x8] sm:$0xff] (!%p190_p9)   ;;  %v661_v11 = vld [vmem:[%s939_s3 + $0x10] sm:$0xff] (!%p190_p9)   ;;  %v662_v12 = vld [vmem:[%s939_s3 + $0x58] sm:$0xff] (!%p190_p9)   ;;  %s585_s8 = sshll.u32 (!%p190_p9), %s789_s22, 7  ;;  %s484_s14 = scalar_lea.sflag (!%p190_p9), [#allocation3], %s213_s26 }
  0x11   : > { %590 = vmatprep.subr.bf16.mxu1 (!%p190_p9), %v658_v7  ;;  %v663_v13 = vld [vmem:[%s939_s3 + $0x18] sm:$0xff] (!%p190_p9)   ;;  %v664_v14 = vld [vmem:[%s939_s3 + $0x60] sm:$0xff] (!%p190_p9)   ;;  %v666_v16 = vld [vmem:[%s939_s3 + $0x68] sm:$0xff] (!%p190_p9)   ;;  %v230_v24 = vsub.s32 (!%p190_p9), 0, %v229_v23  ;;  %v234_v26 = vsub.s32 (!%p190_p9), 1, %v229_v23  ;;  %s737_s15 = smov (!%p190_p9), [#allocation2]  }
  0x12   : > { %v665_v15 = vld [vmem:[%s939_s3 + $0x20] sm:$0xff] (!%p190_p9)   ;;  %v667_v17 = vld [vmem:[%s939_s3 + $0x28] sm:$0xff] (!%p190_p9)   ;;  %v668_v18 = vld [vmem:[%s939_s3 + $0x70] sm:$0xff] (!%p190_p9)  }
  0x13   : > { %265 = vmatpush1.bf16.msra.mxu0 (!%p190_p9), %v655_v4  ;;  %v669_v19 = vld [vmem:[%s939_s3 + $0x30] sm:$0xff] (!%p190_p9)   ;;  %v670_v20 = vld [vmem:[%s939_s3 + $0x78] sm:$0xff] (!%p190_p9)   ;;  %v226_v25 = vld [vmem:[%s938_s2] sm:$0x3] (!%p190_p9) }
  0x14   : > { %591 = vmatpush3.bf16.msra.mxu1 (!%p190_p9), %v659_v9  ;;  %v671_v21 = vld [vmem:[%s939_s3 + $0x38] sm:$0xff] (!%p190_p9)   ;;  %v231_v27 = vrot.slane (!%p190_p9), %v226_v25, %v230_v24  ;;  %v235_v28 = vrot.slane (!%p190_p9), %v226_v25, %v234_v26  ;;  %v567_v40 = vld [vmem:[%s940_s4] ss:$0 sm:$0xff] (!%p190_p9) }
  0x15   : > { %s217_s13 = scalar_select %p216_p10, %s789_s22, 1  ;;  %592 = vmatprep.subr.bf16.mxu1 %v660_v10 }
  0x17   : > { %s561_s16 = sshll.u32 %s217_s13, 2  ;;  %s893_s13 = scalar_lea.hbm %s941_s5, %s585_s8 }
  0x18   : > { %s219_s30 = scalar_lea.vmem %s936_s0, %s561_s16  ;;  %593 = vmatpush3.bf16.msra.mxu1 %v661_v11  ;;  %s676_s16 = sshll.u32 %s737_s15, 4  ;;  %s677_s16 = int_to_ptr.vmem [resolvable:$false] %s676_s16 }
  0x19   : > { %v221_v8 = vld [vmem:[%s219_s30] sm:$0xf]  ;;  %594 = vmatprep.subr.bf16.mxu1 %v662_v12  ;;  %s560_s30 = sshll.u32 %s213_s26, 3  ;;  %s678_s17 = scalar_lea.vmem %s677_s16, 256 }
  0x1a   : > { %566 = vmatmul.mubr.msk.bf16.vlgmr.msra.gmra.mrb[0].mxu0 %vm258_vm0, %v221_v8  ;;  %s215_s9 = scalar_lea.vmem [#allocation2], %s560_s30 }
  0x1b   : > { %s497_s10 = sshll.u32 %s215_s9, 4  ;;  %s895_s10 = int_to_ptr.vmem [resolvable:$true] %s497_s10 }
  0x1c   : > { %595 = vmatpush3.bf16.msra.mxu1 %v663_v13  ;;  %s672_s22 = scalar_lea.vmem %s895_s10, 128  ;;  %p679_p0 = scmp.lt.s32.totalorder %s895_s10, %s677_s16 }
  0x1d   : > { %596 = vmatprep.subr.bf16.mxu1 %v664_v14  ;;  %p673_p11 = scmp.ne.s32.totalorder %s895_s10, %s672_s22  ;;  %p680_p1 = scmp.lt.s32.totalorder %s678_s17, %s672_s22 }
  0x1f   : > { %p674_p12 = pnand %p673_p11, %p806_p5  ;;  %p681_p2 = por %p680_p1, %p679_p0 }
  0x20   : > { %597 = vmatpush3.bf16.msra.mxu1 %v665_v15 }
  0x21   : > { %598 = vmatprep.subr.bf16.mxu1 %v666_v16  ;;  %p675_p13 = pneg %p674_p12 }
  0x23   : > { %p682_p3 = pnand %p681_p2, %p675_p13 }
  0x24   : > { %599 = vmatpush3.bf16.msra.mxu1 %v667_v17 }
  0x25   : > { %600 = vmatprep.subr.bf16.mxu1 %v668_v18 }
  0x28   : > { %601 = vmatpush3.bf16.msra.mxu1 %v669_v19 }
  0x29   : > { %602 = vmatprep.subr.bf16.mxu1 %v670_v20 }
  0x2c   : > { %603 = vmatpush3.bf16.msra.mxu1 %v671_v21 }
  0xed   : > { %v296_v29 = vpop.f32.mrb[0].mxu0 }
  0xee   : > { %v297_v30 = vadd.f32 %v296_v29, %v231_v27  ;;  %v298_v31 = vpop.f32.mrb[1].mxu0 }
  0xef   : > { %v299_v32 = vadd.f32 %v298_v31, %v235_v28  ;;  %v300_v33 = vpop.f32.mrb[2].mxu0 }
  0xf0   : > { %v303_v34 = vmax.f32 %v297_v30, 0.0  ;;  %v301_v35 = vpop.f32.mrb[3].mxu0 }
  0xf1   : > { %v304_v36 = vmax.f32 %v299_v32, 0.0 }
  0xf2   : > { %v305_v38 = vpack.c.bf16 %v303_v34, %v303_v34 }
  0xf3   : > { %v306_v37 = vpack.c.bf16 %v304_v36, %v304_v36 }
  0xf5   : > { %474 = vmatprep.mubr.bf16.mxu1 %v306_v37 }
  0xf6   : > { %475 = vmatmul.mubr.bf16.vlgmr.msra.gmra.mrb[0].mxu1 %v305_v38 }
 0x1c9   : > { %v604_v39 = vpop.f32.mrb[0].mxu1 }
 0x1ca   : > { %v605_v41 = vpop.f32.mrb[1].mxu1 }
 0x1cb   : > { %v606_v42 = vadd.f32 %v605_v41, %v604_v39  ;;  %v607_v43 = vpop.f32.mrb[2].mxu1 }
 0x1cc   : > { %v608_v44 = vpop.f32.mrb[3].mxu1 }
 0x1cd   : > { %v477_v45 = vadd.f32 %v606_v42, %v567_v40 }
 0x1cf   : > { %482 = vst.msk [vmem:[%s215_s9] sm:$0xff] %vm258_vm0, %v477_v45 }
 0x1d0   : > { %685 = shalt.err (!%p682_p3)
}
 0x1d1   : > { %s686_s23 = scalar_lea.hbm %s893_s13, 128  ;;  %s690_s30 = scalar_lea.hbm %s941_s5, 256 }
 0x1d2   : > { %p687_p4 = scmp.ne.s32.totalorder %s893_s13, %s686_s23  ;;  %p691_p9 = scmp.lt.u32.totalorder %s893_s13, %s941_s5 }
 0x1d3   : > { %p692_p10 = scmp.lt.u32.totalorder %s690_s30, %s686_s23  ;;  %p694_p12 = scmp.lt.u32.totalorder %s686_s23, %s893_s13 }
 0x1d4   : > { %p688_p7 = pnand %p687_p4, %p806_p5 }
 0x1d5   : > { %p693_p11 = por %p692_p10, %p691_p9 }
 0x1d6   : > { %p689_p8 = pneg %p688_p7 }
 0x1d7   : > { %p695_p13 = por %p694_p12, %p693_p11 }
 0x1d9   : > { %p696_p0 = pnand %p695_p13, %p689_p8 }
 0x1db   : > { %699 = shalt.err (!%p696_p0)
}
 0x1dc   : > { %610 = dma.vmem_to_hbm [thread:$0]  (%p806_p5), %s895_s10, 128, %s893_s13, %s484_s14  }
 0x1dd PF: > { %p616_p1 = scmp.ge.s32.totalorder %s734_s21, 2  ;;  %s509_s8 = sand.u32 1, %s722_s18  }
 0x1de   : > { %s510_s9 = scalar_lea.sflag [#allocation3], %s509_s8 }
 0x1df   : > { %p613_p2 = pnand %p616_p1, %p810_p6 }
 0x1e1   : > { %717 = dma.done.wait (!%p613_p2), %s510_s9, 128  }
 0x1e2   : > { %719 = vsyncadd (!%p613_p2), %s510_s9, 4294967168  ;;  %p15_p3 = scmp.ge.s32.totalorder %s793_s24, 4   ;;  %s944_s18 = smov %s726_s19 }
 0x1e3   : > { %s945_s19 = smov %s730_s20  ;;  %s946_s20 = smov %s804_s27 }
 0x1e4   : > { %s947_s21 = smov %s793_s24  ;;  %17 = sbr.rel (!%p15_p3) target bundleno = 3 (0x3), region = 75 }
 0x1eb   :  { %515 = vsyncpa [#allocation3], 1 }
 0x1ec   :  { %517 = vsyncpa [#allocation3 + $0x1], 1 }

</bundles_post_ra>
